<compile_context>
chip_gen: v5e
topology: v5e:2x2
jax: 0.10.0
libtpu: 0.0.40
codegen_flags: <defaults>
</compile_context>

<pallas_src>
import math

import jax
import jax.numpy as jnp
from jax.experimental import pallas as pl
from jax.experimental.pallas import tpu as pltpu


def _round_up(n, m):
    return ((n + m - 1) // m) * m


def _pick_tile(total, unit, cap):
    """Largest multiple of `unit` <= cap that divides `total` (unit | total)."""
    cap = max(unit, min(int(cap), int(total)))
    best = unit
    t = unit
    while t <= cap:
        if total % t == 0:
            best = t
        t += unit
    return best


def _select_tiles(nq, nt, d, tq_max, tn_max, vmem_target):
    """Divisor-aware, D-aware (nq_pad, tq, nt_pad, tn) selection."""
    # --- query axis ---
    if nq <= tq_max:
        nq_pad, tq = nq, nq                       # one query tile, zero row padding
    else:
        nq_pad = _round_up(nq, 8)
        tq = _pick_tile(nq_pad, 8, tq_max)
    # --- train axis (lane-dense, divisor-aware) ---
    nt_pad = _round_up(nt, 128)
    tn_cap = int(tn_max)
    if nq_pad // tq == 1 and nt_pad >= 2 * 128:
        # keep >=2 (prefer ~4) TN steps so megacore can shard the grid and the
        # W stream double-buffers on the single-query (GEMV) path.
        pref = nt_pad // 4 if nt_pad >= 4 * 128 else nt_pad // 2
        tn_cap = min(tn_cap, max(128, pref))
    tn = _pick_tile(nt_pad, 128, tn_cap)

    # --- D-aware VMEM budget: double-buffered f32 tiles (x, wt, x2n, wb, out) ---
    def budget(tq_, tn_):
        return 2 * 4 * (tq_ * d + d * tn_ + tq_ * 1 + 2 * tn_ + tq_ * tn_)

    while budget(tq, tn) > vmem_target and tn > 128:
        tn = _pick_tile(nt_pad, 128, tn // 2)
    while budget(tq, tn) > vmem_target and tq > 8:
        if nq <= tq_max:
            break                                  # single-tile query path; keep tq == nq
        tq = _pick_tile(nq_pad, 8, max(8, tq // 2))
    return nq_pad, tq, nt_pad, tn


def _pnn_kernel(x_ref, wt_ref, x2n_ref, wb_ref, o_ref):
    """One (TQ, TN) tile of coef * exp(-||x - w||^2 / (2 sigma^2)) * beta.

    All sigma / coefficient scaling is folded host-side:
      x_ref   : (TQ, D)  query tile (f32)
      wt_ref  : (D, TN)  class-sorted W^T / sigma^2   (zeros in padded columns)
      x2n_ref : (TQ, 1)  -||x_i||^2 / (2 sigma^2)
      wb_ref  : (2, TN)  row 0 = -||w_j||^2 / (2 sigma^2), row 1 = coef*beta_j
      o_ref   : (TQ, TN)
    Pure MXU matmul -> add -> clamp -> exp -> mul; no baked scalar constants.
    """
    xw = jnp.dot(x_ref[...], wt_ref[...], preferred_element_type=jnp.float32)   # MXU
    e = jnp.minimum(x2n_ref[...] + wb_ref[0:1, :] + xw, 0.0)                    # VPU (exponent <= 0)
    o_ref[...] = (jnp.exp(e) * wb_ref[1:2, :]).astype(o_ref.dtype)              # EUP + VPU


def pnn_weighted_pdf(x, w_sorted, beta_sorted, sigma, *,
                     tq_max=256, tn_max=2048, out_dtype=jnp.float32,
                     vmem_target=12 * 1024 * 1024):
    """Weighted Parzen kernel responses, tiled over (n_query, n_train)."""
    x = jnp.asarray(x, jnp.float32)
    w_sorted = jnp.asarray(w_sorted, jnp.float32)
    beta_sorted = jnp.asarray(beta_sorted, jnp.float32)
    nq, d = x.shape
    nt = w_sorted.shape[0]

    nq_pad, tq, nt_pad, tn = _select_tiles(nq, nt, d, tq_max, tn_max, vmem_target)

    sigma = float(sigma)
    inv_s2 = 1.0 / (sigma * sigma)
    coef = 1.0 / (math.sqrt(2.0 * math.pi) * sigma)

    # Host-side (XLA) precompute: transpose + all scalar scaling folded into
    # the operands (kernel body carries no constants -> no per-sigma recompile).
    x_p = x if nq_pad == nq else jnp.zeros((nq_pad, d), jnp.float32).at[:nq].set(x)
    wt_p = jnp.zeros((d, nt_pad), jnp.float32).at[:, :nt].set(w_sorted.T * inv_s2)
    x2n_p = (-0.5 * inv_s2) * jnp.sum(x_p * x_p, axis=-1, keepdims=True)      # (nq_pad, 1)
    w2n = (-0.5 * inv_s2) * jnp.sum(w_sorted * w_sorted, axis=-1)             # (nt,)
    wb_p = jnp.zeros((2, nt_pad), jnp.float32)
    wb_p = wb_p.at[0, :nt].set(w2n).at[1, :nt].set(coef * beta_sorted)        # beta'=0 in padded cols

    out_itemsize = jnp.dtype(out_dtype).itemsize
    cost = pl.CostEstimate(
        flops=2 * nq_pad * nt_pad * d + 5 * nq_pad * nt_pad,
        transcendentals=nq_pad * nt_pad,
        bytes_accessed=4 * (nq_pad * d + d * nt_pad + nq_pad + 2 * nt_pad)
                       + out_itemsize * nq_pad * nt_pad)

    out = pl.pallas_call(
        _pnn_kernel,
        out_shape=jax.ShapeDtypeStruct((nq_pad, nt_pad), out_dtype),
        grid=(nq_pad // tq, nt_pad // tn),
        in_specs=[
            pl.BlockSpec((tq, d), lambda qi, ti: (qi, 0)),
            pl.BlockSpec((d, tn), lambda qi, ti: (0, ti)),
            pl.BlockSpec((tq, 1), lambda qi, ti: (qi, 0)),
            pl.BlockSpec((2, tn), lambda qi, ti: (0, ti)),
        ],
        out_specs=pl.BlockSpec((tq, tn), lambda qi, ti: (qi, ti)),
        compiler_params=pltpu.CompilerParams(
            dimension_semantics=("parallel", "parallel"),
            vmem_limit_bytes=32 * 1024 * 1024),
        cost_estimate=cost,
    )(x_p, wt_p, x2n_p, wb_p)

    return out[:nq, :nt]


class TrainablePatternLayerPNNPallas:
    """JAX/Pallas re-implementation of the PyTorch module's forward pass."""

    def __init__(self, sigma, tau, regularization, n_classes):
        self.sigma = sigma
        self.tau = tau
        self.regularization = regularization
        self.n_classes = n_classes
        self.W = None
        self.y_train = None
        self.beta = None

    def set_fitted_state(self, W, y_train, beta_logits):
        """Deterministic stand-in for .fit(): store patterns, labels and
        beta = softmax(beta_logits).
        # TODO(synk): the Adam training loop / leave-one-out log-likelihood of
        # .fit() is host-side optimization, not part of forward."""
        self.W = jnp.asarray(W, dtype=jnp.float32)
        self.y_train = jnp.asarray(y_train, dtype=jnp.int32)
        self.beta = jax.nn.softmax(jnp.asarray(beta_logits, dtype=jnp.float32))

        # torch.unique iterates classes in sorted order, keeping original
        # within-class order -> stable argsort reproduces the PyTorch
        # concatenation order.  Done once here, not per-forward.
        order = jnp.argsort(self.y_train, stable=True)
        self._w_sorted = self.W[order]
        self._beta_sorted = self.beta[order]
        self._y_sorted = self.y_train[order]

    def forward(self, x):
        x = jnp.asarray(x, dtype=jnp.float32)
        if x.ndim == 1:
            x = x[None, :]
        # PyTorch forward returns only the first query's responses -> only the
        # first row is fed to the kernel; output tile is (1, tn), not (8, tn).
        weighted_N = pnn_weighted_pdf(
            x[:1], self._w_sorted, self._beta_sorted, self.sigma)
        return weighted_N[0], self._y_sorted, self.beta


def _full_reference(x, Wp, bp, sigma):
    """Pure-JAX reference of the same math (class-sorted inputs)."""
    d2 = jnp.sum((x[:, None, :] - Wp[None, :, :]) ** 2, axis=-1)
    coef = 1.0 / (jnp.sqrt(2.0 * jnp.pi) * sigma)
    return coef * jnp.exp(-d2 / (2.0 * sigma ** 2)) * bp[None, :]


if __name__ == "__main__":
    key = jax.random.PRNGKey(0)
    k_w, k_y, k_b, k_x = jax.random.split(key, 4)

    n_train, d, n_query, n_classes = 384, 32, 3, 4
    sigma, tau = 4.0, 1.0

    W = jax.random.normal(k_w, (n_train, d), dtype=jnp.float32)
    y_train = jax.random.randint(k_y, (n_train,), 0, n_classes, dtype=jnp.int32)
    beta_logits = jax.random.normal(k_b, (n_train,), dtype=jnp.float32)
    x = jax.random.normal(k_x, (n_query, d), dtype=jnp.float32)

    layer = TrainablePatternLayerPNNPallas(sigma, tau, "l2", n_classes)
    layer.set_fitted_state(W, y_train, beta_logits)

    # --- Real forward path: single query row, (1, nt) output tile, TN-only grid.
    weighted_n, y_values, beta = layer.forward(x)
    jax.block_until_ready((weighted_n, y_values, beta))

    ref_row0 = _full_reference(x[:1], layer._w_sorted, layer._beta_sorted, sigma)[0]
    assert weighted_n.shape == (n_train,)
    assert y_values.shape == (n_train,)
    assert beta.shape == (n_train,)
    assert jnp.allclose(weighted_n, ref_row0, rtol=1e-4, atol=1e-6)

    # --- Batch path with a real multi-tile (3 x 3) grid of (8, 128) tiles.
    xq = jax.random.normal(jax.random.PRNGKey(1), (24, d), dtype=jnp.float32)
    out_tiled = pnn_weighted_pdf(xq, layer._w_sorted, layer._beta_sorted, sigma,
                                 tq_max=8, tn_max=128)
    jax.block_until_ready(out_tiled)
    ref_tiled = _full_reference(xq, layer._w_sorted, layer._beta_sorted, sigma)
    assert out_tiled.shape == (24, n_train)
    assert jnp.allclose(out_tiled, ref_tiled, rtol=1e-4, atol=1e-6)

    # --- Optional bf16 output (f32 math, halved writeback); looser tolerance.
    out_bf16 = pnn_weighted_pdf(xq, layer._w_sorted, layer._beta_sorted, sigma,
                                out_dtype=jnp.bfloat16)
    jax.block_until_ready(out_bf16)
    assert out_bf16.dtype == jnp.bfloat16
    assert jnp.allclose(out_bf16.astype(jnp.float32), ref_tiled,
                        rtol=2e-2, atol=1e-4)

    print("KERNEL_OK")
</pallas_src>

<mosaic_0001>
module attributes {stable_mosaic.version = 11 : i64} {
  func.func @_pnn_kernel(%arg0: i32, %arg1: i32, %arg2: memref<1x32xf32, #tpu.memory_space<vmem>>, %arg3: memref<32x128xf32, #tpu.memory_space<vmem>>, %arg4: memref<1x1xf32, #tpu.memory_space<vmem>>, %arg5: memref<2x128xf32, #tpu.memory_space<vmem>>, %arg6: memref<1x128xf32, #tpu.memory_space<vmem>>) attributes {dimension_semantics = [#tpu.dimension_semantics<parallel>, #tpu.dimension_semantics<parallel>], iteration_bounds = array<i64: 1, 3>, scalar_prefetch = 0 : i64, scratch_operands = 0 : i64, tpu.core_type = #tpu.core_type<tc>, window_params = [{transform_indices = @transform_0, window_bounds = array<i64: 1, 32>}, {transform_indices = @transform_1, window_bounds = array<i64: 32, 128>}, {transform_indices = @transform_2, window_bounds = array<i64: 1, 1>}, {transform_indices = @transform_3, window_bounds = array<i64: 2, 128>}, {transform_indices = @transform_4, window_bounds = array<i64: 1, 128>}]} {
    %c0 = arith.constant 0 : index
    %c0_0 = arith.constant 0 : index
    %0 = vector.load %arg2[%c0, %c0_0] : memref<1x32xf32, #tpu.memory_space<vmem>>, vector<1x32xf32>
    %c0_1 = arith.constant 0 : index
    %c0_2 = arith.constant 0 : index
    %1 = vector.load %arg3[%c0_1, %c0_2] : memref<32x128xf32, #tpu.memory_space<vmem>>, vector<32x128xf32>
    %cst = arith.constant dense<0.000000e+00> : vector<1x128xf32>
    %2 = tpu.matmul %0, %1, %cst {dimension_numbers = #tpu.dot_dimension_numbers<[1], [0], [0], [1], [0, 0, 1, 1], [], []>} : vector<1x32xf32>, vector<32x128xf32>, vector<1x128xf32> -> vector<1x128xf32>
    %c0_3 = arith.constant 0 : index
    %c0_4 = arith.constant 0 : index
    %3 = vector.load %arg4[%c0_3, %c0_4] : memref<1x1xf32, #tpu.memory_space<vmem>>, vector<1x1xf32>
    %c0_5 = arith.constant 0 : index
    %c0_6 = arith.constant 0 : index
    %4 = vector.load %arg5[%c0_5, %c0_6] : memref<2x128xf32, #tpu.memory_space<vmem>>, vector<1x128xf32>
    %5 = vector.broadcast %3 : vector<1x1xf32> to vector<1x128xf32>
    %6 = arith.addf %5, %4 : vector<1x128xf32>
    %7 = arith.addf %6, %2 : vector<1x128xf32>
    %cst_7 = arith.constant 0.000000e+00 : f32
    %8 = vector.broadcast %cst_7 : f32 to vector<1x128xf32>
    %9 = arith.minimumf %7, %8 : vector<1x128xf32>
    %10 = math.exp %9 : vector<1x128xf32>
    %c1 = arith.constant 1 : index
    %c0_8 = arith.constant 0 : index
    %11 = vector.load %arg5[%c1, %c0_8] : memref<2x128xf32, #tpu.memory_space<vmem>>, vector<1x128xf32>
    %12 = arith.mulf %10, %11 : vector<1x128xf32>
    %c0_9 = arith.constant 0 : index
    %c0_10 = arith.constant 0 : index
    %13 = vector.load %arg6[%c0_9, %c0_10] : memref<1x128xf32, #tpu.memory_space<vmem>>, vector<1x128xf32>
    tpu.vector_store %arg6[%c0_9, %c0_10], %12 {strides = array<i32>} : memref<1x128xf32, #tpu.memory_space<vmem>>, vector<1x128xf32>,
    return
  }
  func.func @transform_0(%arg0: i32, %arg1: i32) -> (i32, i32) {
    %c0_i32 = arith.constant 0 : i32
    %c0_i32_0 = arith.constant 0 : i32
    return %arg0, %c0_i32 : i32, i32
  }
  func.func @transform_1(%arg0: i32, %arg1: i32) -> (i32, i32) {
    %c0_i32 = arith.constant 0 : i32
    %c0_i32_0 = arith.constant 0 : i32
    return %c0_i32, %arg1 : i32, i32
  }
  func.func @transform_2(%arg0: i32, %arg1: i32) -> (i32, i32) {
    %c0_i32 = arith.constant 0 : i32
    %c0_i32_0 = arith.constant 0 : i32
    return %arg0, %c0_i32 : i32, i32
  }
  func.func @transform_3(%arg0: i32, %arg1: i32) -> (i32, i32) {
    %c0_i32 = arith.constant 0 : i32
    %c0_i32_0 = arith.constant 0 : i32
    return %c0_i32, %arg1 : i32, i32
  }
  func.func @transform_4(%arg0: i32, %arg1: i32) -> (i32, i32) {
    %c0_i32 = arith.constant 0 : i32
    return %arg0, %arg1 : i32, i32
  }
}

</mosaic_0001>

<bundles_post_ra>
// kernel: tpu_custom_call.1
= control target key start
LH: loop header
LB: loop body
LE: loop exit
PB: predicated region body
PF: predicated region fallthrough
CT: control target
= control target key end

     0   :  { %s898_s0 = inlined_call_operand.vmem [shape: f32[1,32], index: 0, kind: input, shape index: {}]   ;;  %s899_s1 = inlined_call_operand.hbm [shape: f32[32,384], index: 1, kind: input, shape index: {}]   ;;  %s900_s2 = inlined_call_operand.<no memory space> [shape: f32[1,1], index: 2, kind: input, shape index: {}]   ;;  %s901_s3 = inlined_call_operand.hbm [shape: f32[2,384], index: 3, kind: input, shape index: {}]   ;;  %s902_s4 = inlined_call_operand.hbm [shape: f32[1,384], index: 4, kind: output, shape index: {}]  }
   0x1   :  { %903 = sst [smem:[#allocation12_spill]] %s899_s1  ;;  %v9_v0 = vstv %s900_s2 }
   0x2   :  { %10 = vst [vmem:[#allocation2] sm:$0x1] %v9_v0 }
   0x3   :  { %11 = vsyncpa [#allocation4], 0 }
   0x4   :  { %13 = vsyncpa [#allocation4 + $0x1], 0 }
   0x5   :  { %14 = vsyncpa [#allocation7], 0 }
   0x6   :  { %16 = vsyncpa [#allocation7 + $0x1], 0 }
   0x7   :  { %17 = vsyncpa [#allocation5], 0 }
   0x8   :  { %19 = vsyncpa [#allocation5 + $0x1], 0  ;;  %s752_s17 = smov 0   ;;  %s754_s18 = smov 0  }
   0x9   :  { %s756_s19 = smov 0   ;;  %s758_s20 = smov 0  }
   0xa   :  { %s760_s21 = smov 0   ;;  %s762_s22 = smov 0  }
   0xb LB: > { %s482_s2 = sadd.s32 4294967295, %s718_s22   ;;  %s483_s23 = sadd.s32 4294967294, %s718_s22   ;;  %s718_s22 = sphi %s762_s22, %s25_s22   ;;  %s714_s21 = sphi %s760_s21, %s914_s21   ;;  %s710_s20 = sphi %s758_s20, %s913_s20   ;;  %s706_s19 = sphi %s756_s19, %s912_s19   ;;  %s702_s18 = sphi %s754_s18, %s911_s18   ;;  %s698_s17 = sphi %s752_s17, %s910_s17  }
   0xc   : > { %s34_s24 = sadd.s32 1, %s714_s21  ;;  %s70_s25 = sadd.s32 1, %s706_s19 }
   0xd   : > { %p35_p0 = scmp.ge.s32.totalorder %s34_s24, 3  ;;  %p77_p1 = scmp.ne.s32.totalorder %s706_s19, %s702_s18 }
   0xe   : > { %p78_p2 = scmp.eq.s32.totalorder %s718_s22, 0  ;;  %p83_p3 = scmp.ne.s32.totalorder %s702_s18, %s698_s17 }
   0xf   : > { %s916_s24 = smov (%p35_p0, %s34_s24), 0  ;;  %p84_p5 = scmp.eq.s32.totalorder %s482_s2, 0 }
  0x10   : > { %p793_p4 = por %p78_p2, %p77_p1  ;;  %s67_s27 = ssub.s32 %s714_s21, %s916_s24 }
  0x11   : > { %p161_p6 = scmp.eq.s32.totalorder %s482_s2, 2  ;;  %p68_p7 = scmp.eq.s32.totalorder %s67_s27, 0 }
  0x12   : > { %p799_p8 = por %p84_p5, %p83_p3  ;;  %p167_p10 = scmp.eq.s32.totalorder %s483_s23, 2 }
  0x13   : > { %p803_p9 = por %p161_p6, %p77_p1  ;;  %p515_p12 = scmp.lt.s32.totalorder %s718_s22, 3 }
  0x14   : > { %s808_s30 = scalar_select %p68_p7, %s706_s19, %s70_s25  }
  0x15   : > { %p810_p11 = por %p167_p10, %p83_p3  ;;  %s816_s6 = sand.u32 1, %s706_s19  }
  0x16   : > { %s488_s7 = sshll.u32 %s816_s6, 5  ;;  %s489_s8 = sshll.u32 %s714_s21, 3 }
  0x17   : > { %s908_s1 = sld [smem:[#allocation12_spill]]  ;;  %s203_s12 = scalar_lea.vmem [#allocation3], %s488_s7 }
  0x18   : > { %s210_s13 = sshll.u32 %s203_s12, 4  ;;  %p825_p13 = pnand %p515_p12, %p793_p4  ;;  %s211_s13 = int_to_ptr.vmem [resolvable:$true] %s210_s13 }
  0x19   : > { %s200_s16 = scalar_lea.sflag [#allocation4], %s816_s6  ;;  %s720_s2 = smov 384  }
  0x1a   : > { %s721_s23 = smov 128   ;;  %s722_s25 = smov 8  }
  0x1b   : > { %p492_p0 = scmp.ge.s32.totalorder %s718_s22, 1  ;;  %p237_p1 = scmp.lt.s32.totalorder %s718_s22, 4 }
  0x1c   : > { %s490_s27 = sshll.u32 %s816_s6, 1  ;;  %s491_s7 = sshll.u32 %s714_s21, 1 }
  0x1d   : > { %s207_s11 = scalar_lea.hbm %s908_s1, %s489_s8  ;;  %p238_p2 = pnand %p492_p0, %p237_p1 }
  0x1e   : > { %s208_s14 = sshll.u32 %s207_s11, 4  ;;  %s224_s8 = scalar_lea.vmem [#allocation6], %s490_s27  ;;  %s209_s14 = int_to_ptr.hbm [resolvable:$true] %s208_s14 }
  0x1f   : > { %507 = dma.hbm_to_vmem [thread:$0]  (!%p825_p13), %s209_s14, 512, %s211_s13, %s200_s16, %s720_s2, %s721_s23, %s722_s25  }
  0x20   : > { %s232_s26 = sshll.u32 %s224_s8, 4  ;;  %s228_s11 = scalar_lea.hbm %s901_s3, %s491_s7  ;;  %s233_s26 = int_to_ptr.vmem [resolvable:$true] %s232_s26 }
  0x21   : > { %s230_s12 = sshll.u32 %s228_s11, 4  ;;  %s221_s1 = scalar_lea.sflag [#allocation7], %s816_s6  ;;  %s231_s12 = int_to_ptr.hbm [resolvable:$true] %s230_s12 }
  0x22   : > { %510 = dma.hbm_to_vmem [thread:$0]  (!%p825_p13), %s231_s12, 32, %s233_s26, %s221_s1  }
  0x23   : > { %241 = sbr.rel (%p238_p2) target bundleno = 196 (0xc4), region = 36  ;;  %s843_s13 = sand.u32 (!%p238_p2), 1, %s702_s18  }
  0x24   : > { %s493_s14 = sshll.u32 (!%p238_p2), %s843_s13, 5  ;;  %s244_s16 = scalar_lea.sflag (!%p238_p2), [#allocation4], %s843_s13 }
  0x25   : > { %s247_s2 = scalar_lea.vmem (!%p238_p2), [#allocation3], %s493_s14 }
  0x28   : > { %685 = dma.done.wait (%p799_p8), %s244_s16, 512  }
  0x29   : > { %687 = vsyncadd (%p799_p8), %s244_s16, 4294966784  ;;  %s494_s6 = sshll.u32 %s843_s13, 1  ;;  %s254_s1 = scalar_lea.sflag [#allocation7], %s843_s13 }
  0x2a   : > { %s257_s15 = scalar_lea.vmem [#allocation6], %s494_s6 }
  0x2b   : > { %689 = dma.done.wait (%p799_p8), %s254_s1, 32  }
  0x2c   : > { %691 = vsyncadd (%p799_p8), %s254_s1, 4294967264  ;;  %v723_v1 = vmov 0   ;;  %v303_v2 = vld [vmem:[%s247_s2 + $0x18] sm:$0xff]  ;;  %v302_v3 = vld [vmem:[%s247_s2 + $0x10] sm:$0xff]  ;;  %vm304_vm0 = vcmask 261120   ;;  %s355_s7 = scalar_lea.hbm %s902_s4, %s710_s20  ;;  %s292_s8 = scalar_lea.vmem [#allocation8], %s843_s13 }
  0x2d   : > { %569 = vset.pattern.permute.xlu0 %v723_v1  ;;  %320 = vmatpush.msra.mxu0 %v303_v2  ;;  %v328_v4 = vld [vmem:[#allocation2] sm:$0x1]  ;;  %v301_v5 = vld [vmem:[%s247_s2 + $0x8] sm:$0xff]  ;;  %v300_v6 = vld [vmem:[%s247_s2] sm:$0xff]  ;;  %s357_s26 = sshll.u32 %s292_s8, 4  ;;  %s359_s9 = sshll.u32 %s355_s7, 4  ;;  %s358_s26 = int_to_ptr.vmem [resolvable:$true] %s357_s26  ;;  %s360_s9 = int_to_ptr.hbm [resolvable:$true] %s359_s9 }
  0x2e   : > { %332 = vperm.xlu0 %569, %v328_v4   ;;  %v299_v7 = vld [vmem:[%s898_s0] sm:$0x1]  ;;  %v329_v10 = vld [vmem:[%s257_s15] sm:$0x1]  ;;  %v341_v16 = vld [vmem:[%s257_s15 + $0x1] sm:$0x1] }
  0x2f   : > { %321 = vmatpush.msra.mxu0 %v302_v3  ;;  %s345_s10 = scalar_lea.sflag [#allocation5], %s843_s13  ;;  %s646_s11 = sshra.s32 %s360_s9, 4  ;;  %s647_s11 = int_to_ptr.hbm [resolvable:$true] %s646_s11 }
  0x30   : > { %s648_s12 = scalar_lea.hbm %s647_s11, 1  ;;  %s652_s20 = scalar_lea.hbm %s902_s4, 3 }
  0x31   : > { %322 = vmatpush.msra.mxu0 %v301_v5  ;;  %p649_p3 = scmp.ne.s32.totalorder %s647_s11, %s648_s12  ;;  %p653_p6 = scmp.lt.s32.totalorder %s647_s11, %s902_s4 }
  0x32   : > { %p654_p7 = scmp.lt.s32.totalorder %s652_s20, %s648_s12 }
  0x33   : > { %323 = vmatpush.msra.mxu0 %v300_v6  ;;  %p650_p4 = pnand %p649_p3, %p803_p9 }
  0x34   : > { %495 = vmatmul.msk.f32.vlgmr.msra.gmra.mxu0 %vm304_vm0, %v299_v7  ;;  %p655_p8 = por %p654_p7, %p653_p6 }
  0x35   : > { %p651_p5 = pneg %p650_p4 }
  0x37   : > { %p656_p10 = pnand %p655_p8, %p651_p5 }
  0xa0   : > { %v333_v8 = vpop.permute.xlu0 %332 }
  0xa1   : > { %v335_v9 = vperm.slane %v333_v8, 0 }
  0xa3   : > { %v336_v11 = vadd.f32 %v335_v9, %v329_v10 }
  0xb1   : > { %v325_v12 = vpop.f32.mrf.mxu0 }
  0xb2   : > { %v337_v13 = vadd.f32 %v336_v11, %v325_v12 }
  0xb4   : > { %v338_v14 = vmin.f32 %v337_v13, 0.0 }
  0xb6   : > { %v339_v15 = vmul.f32 1.442695, %v338_v14 }
  0xb8   : > { %570 = vpow2.f32 %v339_v15 }
  0xbe   : > { %v571_v17 = vpop.eup %570 }
  0xbf   : > { %v342_v18 = vmul.f32 %v571_v17, %v341_v16 }
  0xc1   : > { %343 = vst [vmem:[%s292_s8] sm:$0x1] %v342_v18 }
  0xc2   : > { %659 = shalt.err (!%p656_p10)
}
  0xc3   : > { %502 = dma.vmem_to_hbm [thread:$0]  (%p803_p9), %s358_s26, 16, %s360_s9, %s345_s10  }
  0xc4 PF: > { %p516_p12 = scmp.ge.s32.totalorder %s718_s22, 2  ;;  %s371_s13 = sand.u32 1, %s698_s17  }
  0xc5   : > { %s372_s1 = scalar_lea.sflag [#allocation5], %s371_s13 }
  0xc6   : > { %p512_p13 = pnand %p516_p12, %p810_p11 }
  0xc8   : > { %p513_p0 = pneg %p512_p13 }
  0xca   : > { %693 = dma.done.wait (%p513_p0), %s372_s1, 16  }
  0xcb   : > { %695 = vsyncadd (%p513_p0), %s372_s1, 4294967280  ;;  %s25_s22 = sadd.s32 1, %s718_s22   ;;  %s910_s17 = smov %s702_s18 }
  0xcc   : > { %p22_p1 = scmp.ge.s32.totalorder %s25_s22, 5   ;;  %s911_s18 = smov %s706_s19 }
  0xcd   : > { %s912_s19 = smov %s808_s30  ;;  %s913_s20 = smov %s714_s21 }
  0xce   : > { %s914_s21 = smov %s916_s24  ;;  %24 = sbr.rel (!%p22_p1) target bundleno = 11 (0xb), region = 100 }
  0xd3   :  { %377 = vsyncpa [#allocation4], 1 }
  0xd4   :  { %379 = vsyncpa [#allocation4 + $0x1], 1 }
  0xd5   :  { %380 = vsyncpa [#allocation7], 1 }
  0xd6   :  { %382 = vsyncpa [#allocation7 + $0x1], 1 }
  0xd7   :  { %383 = vsyncpa [#allocation5], 1 }
  0xd8   :  { %385 = vsyncpa [#allocation5 + $0x1], 1 }

</bundles_post_ra>
